<compile_context>
chip_gen: v7x
topology: tpu7x:2x2x1
jax: 0.10.0
libtpu: 0.0.40
codegen_flags: <defaults>
</compile_context>

<pallas_src>
import math

import jax
import jax.numpy as jnp
from jax.experimental import pallas as pl
from jax.experimental.pallas import tpu as pltpu

_LANE = 128                              # vreg lane width
_TARGET_BLOCK_BYTES = 6 * 1024 * 1024    # per-buffer tile target (~6 MiB)
_VMEM_LIMIT_BYTES = 48 * 1024 * 1024     # raised scoped-VMEM limit (< 64 MiB v7x physical)


def _sublane(dtype):
    """Dtype-dependent packed sublane unit: 8 for f32, 16 for bf16, 32 for int8/fp8."""
    return max(8, 32 // jnp.dtype(dtype).itemsize)


def _choose_block(extent, unit, cap_elems):
    """Pick a block size along one axis.

    Returns the full extent if it is smaller than one hardware unit (legal:
    block dim == array dim).  Otherwise returns a multiple of `unit`, capped
    by `cap_elems` and never larger than the extent; any remainder is covered
    by an extra (padded, masked) grid step via a cdiv grid.
    """
    if extent <= unit:
        return extent
    cap_units = max(1, cap_elems // unit)
    full_units = extent // unit          # >= 1 here
    return min(cap_units, full_units) * unit


def _prelu_kernel_vmem_alpha(a_ref, x_ref, o_ref):
    # a_ref: VMEM (br, 1) column or (1, bl) row; broadcasts against x (br, bl).
    x = x_ref[...]
    a = a_ref[...].astype(x.dtype)
    o_ref[...] = jnp.where(x >= 0, x, a * x)


def _prelu_kernel_smem_alpha(a_ref, x_ref, o_ref):
    # a_ref: SMEM (1,) scalar alpha (shared across all elements).
    x = x_ref[...]
    a = a_ref[0].astype(x.dtype)
    o_ref[...] = jnp.where(x >= 0, x, a * x)


def prelu(x, weight):
    """PReLU forward.

    x:      (N, *) input (e.g. NCHW); 1-D inputs allowed with a shared weight.
    weight: (1,) or (C,) -- the nn.PReLU parameter.
    """
    x = jnp.asarray(x)
    weight = jnp.asarray(weight).reshape(-1)
    if x.ndim == 0:
        raise ValueError("prelu expects an input of rank >= 1")

    num_params = weight.shape[0]
    shared = num_params == 1

    if x.ndim == 1:
        if not shared:
            raise ValueError("per-channel PReLU requires input rank >= 2")
        N, C, spatial = 1, 1, x.shape[0]
    else:
        N, C = x.shape[0], x.shape[1]
        spatial = math.prod(x.shape[2:]) if x.ndim > 2 else 1
        if not shared and num_params != C:
            raise ValueError(
                f"weight must have 1 or C={C} parameters, got {num_params}")

    dtype = x.dtype
    dbytes = jnp.dtype(dtype).itemsize
    sub = _sublane(dtype)

    # ---- layout selection: keep the lane axis wide & 128-aligned if possible.
    if spatial >= _LANE:
        R, L = N * C, spatial            # rows = (n, c) pairs, lanes = spatial
        layout_a = True
    else:
        R, L = N, C * spatial            # rows = n, lanes = c*spatial
        layout_a = False
    x2 = x.reshape(R, L)

    # ---- block sizes (multiples of (sublane, 128), ~_TARGET_BLOCK_BYTES/tile).
    bl_cap = max(_LANE, _TARGET_BLOCK_BYTES // (sub * dbytes))
    bl = _choose_block(L, _LANE, bl_cap)
    br_cap = max(sub, _TARGET_BLOCK_BYTES // (bl * dbytes))
    br = _choose_block(R, sub, br_cap)

    gr, gl = pl.cdiv(R, br), pl.cdiv(L, bl)

    # ---- megacore: guarantee >= 2 grid steps when the data allows it (v7x: 2 TCs).
    if gr == 1 and gl == 1:
        row_units = R // sub
        lane_units = L // _LANE
        if row_units >= 2:
            br = ((row_units + 1) // 2) * sub
            gr = pl.cdiv(R, br)
        elif lane_units >= 2:
            bl = ((lane_units + 1) // 2) * _LANE
            gl = pl.cdiv(L, bl)

    # ---- alpha delivery.
    if shared:
        # SMEM scalar fast path: no alpha array in HBM, no per-block alpha DMA.
        kernel = _prelu_kernel_smem_alpha
        alpha_arr = weight.astype(jnp.float32).reshape(1)
        alpha_spec = pl.BlockSpec(memory_space=pltpu.MemorySpace.SMEM)
    elif layout_a:
        # Per-row alpha column (N*C, 1), blocked with the same row index.
        kernel = _prelu_kernel_vmem_alpha
        alpha_arr = jnp.broadcast_to(
            weight.astype(dtype)[None, :], (N, C)).reshape(R, 1)
        alpha_spec = pl.BlockSpec((br, 1), lambda i, j: (i, 0))
    else:
        # Alpha lane row (1, C*spatial): each channel's alpha repeated `spatial`
        # times, blocked with the lane index (sublane broadcast in the kernel).
        kernel = _prelu_kernel_vmem_alpha
        alpha_arr = jnp.repeat(weight.astype(dtype), spatial).reshape(1, L)
        alpha_spec = pl.BlockSpec((1, bl), lambda i, j: (0, j))

    out2 = pl.pallas_call(
        kernel,
        out_shape=jax.ShapeDtypeStruct((R, L), dtype),
        grid=(gr, gl),
        in_specs=[
            alpha_spec,
            pl.BlockSpec((br, bl), lambda i, j: (i, j)),
        ],
        out_specs=pl.BlockSpec((br, bl), lambda i, j: (i, j)),
        compiler_params=pltpu.CompilerParams(
            dimension_semantics=("parallel", "parallel"),
            vmem_limit_bytes=_VMEM_LIMIT_BYTES,
        ),
    )(alpha_arr, x2)

    return out2.reshape(x.shape)


if __name__ == "__main__":
    key = jax.random.PRNGKey(0)
    k1, k2, k3 = jax.random.split(key, 3)

    # 1) Per-channel weights (nn.PReLU(num_parameters=C)), NCHW input.
    N, C, H, W = 2, 4, 16, 16
    x = jax.random.normal(k1, (N, C, H, W), dtype=jnp.float32)
    w = 0.25 + 0.05 * jnp.arange(C, dtype=jnp.float32)
    out = jax.block_until_ready(prelu(x, w))
    ref = jnp.maximum(x, 0) + w.reshape(1, C, 1, 1) * jnp.minimum(x, 0)
    assert out.shape == x.shape and out.dtype == x.dtype
    assert jnp.allclose(out, ref, atol=1e-6, rtol=1e-6)

    # 2) Shared weight (nn.PReLU() default) -> SMEM scalar fast path.
    w1 = jnp.full((1,), 0.25, dtype=jnp.float32)
    out1 = jax.block_until_ready(prelu(x, w1))
    ref1 = jnp.maximum(x, 0) + 0.25 * jnp.minimum(x, 0)
    assert jnp.allclose(out1, ref1, atol=1e-6, rtol=1e-6)

    # 3) Small/odd spatial: exercises the (N, C*spatial) lane layout + padded edge tiles.
    x3 = jax.random.normal(k2, (2, 3, 7, 7), dtype=jnp.float32)
    w3 = 0.1 + 0.1 * jnp.arange(3, dtype=jnp.float32)
    out3 = jax.block_until_ready(prelu(x3, w3))
    ref3 = jnp.maximum(x3, 0) + w3.reshape(1, 3, 1, 1) * jnp.minimum(x3, 0)
    assert jnp.allclose(out3, ref3, atol=1e-6, rtol=1e-6)

    # 4) 1-D input with shared weight (the docstring example, randn(n)).
    x4 = jax.random.normal(k3, (5,), dtype=jnp.float32)
    out4 = jax.block_until_ready(prelu(x4, w1))
    ref4 = jnp.maximum(x4, 0) + 0.25 * jnp.minimum(x4, 0)
    assert jnp.allclose(out4, ref4, atol=1e-6, rtol=1e-6)

    print("KERNEL_OK")
</pallas_src>

<mosaic_0001>
module attributes {stable_mosaic.version = 11 : i64} {
  func.func @_prelu_kernel_vmem_alpha(%arg0: i32, %arg1: i32, %arg2: memref<8x1xf32, #tpu.memory_space<vmem>>, %arg3: memref<8x128xf32, #tpu.memory_space<vmem>>, %arg4: memref<8x128xf32, #tpu.memory_space<vmem>>) attributes {dimension_semantics = [#tpu.dimension_semantics<parallel>, #tpu.dimension_semantics<parallel>], iteration_bounds = array<i64: 1, 2>, scalar_prefetch = 0 : i64, scratch_operands = 0 : i64, tpu.core_type = #tpu.core_type<tc>, window_params = [{transform_indices = @transform_0, window_bounds = array<i64: 8, 1>}, {transform_indices = @transform_1, window_bounds = array<i64: 8, 128>}, {transform_indices = @transform_2, window_bounds = array<i64: 8, 128>}]} {
    %c0 = arith.constant 0 : index
    %c0_0 = arith.constant 0 : index
    %0 = vector.load %arg3[%c0, %c0_0] : memref<8x128xf32, #tpu.memory_space<vmem>>, vector<8x128xf32>
    %c0_1 = arith.constant 0 : index
    %c0_2 = arith.constant 0 : index
    %1 = vector.load %arg2[%c0_1, %c0_2] : memref<8x1xf32, #tpu.memory_space<vmem>>, vector<8x1xf32>
    %cst = arith.constant 0.000000e+00 : f32
    %2 = vector.broadcast %cst : f32 to vector<8x128xf32>
    %3 = arith.cmpf oge, %0, %2 : vector<8x128xf32>
    %4 = vector.broadcast %1 : vector<8x1xf32> to vector<8x128xf32>
    %5 = arith.mulf %4, %0 : vector<8x128xf32>
    %6 = arith.select %3, %0, %5 : vector<8x128xi1>, vector<8x128xf32>
    %c0_3 = arith.constant 0 : index
    %c0_4 = arith.constant 0 : index
    %7 = vector.load %arg4[%c0_3, %c0_4] : memref<8x128xf32, #tpu.memory_space<vmem>>, vector<8x128xf32>
    tpu.vector_store %arg4[%c0_3, %c0_4], %6 {strides = array<i32>} : memref<8x128xf32, #tpu.memory_space<vmem>>, vector<8x128xf32>,
    return
  }
  func.func @transform_0(%arg0: i32, %arg1: i32) -> (i32, i32) {
    %c0_i32 = arith.constant 0 : i32
    %c0_i32_0 = arith.constant 0 : i32
    return %arg0, %c0_i32 : i32, i32
  }
  func.func @transform_1(%arg0: i32, %arg1: i32) -> (i32, i32) {
    %c0_i32 = arith.constant 0 : i32
    return %arg0, %arg1 : i32, i32
  }
  func.func @transform_2(%arg0: i32, %arg1: i32) -> (i32, i32) {
    %c0_i32 = arith.constant 0 : i32
    return %arg0, %arg1 : i32, i32
  }
}

</mosaic_0001>

<bundles_post_ra>
// kernel: tpu_custom_call.1
= control target key start
LH: loop header
LB: loop body
LE: loop exit
PB: predicated region body
PF: predicated region fallthrough
CT: control target
= control target key end

     0   :  { %7 = vsyncpa [#allocation3], 0  ;;  %s703_s0 = inlined_call_operand.vmem [shape: f32[8,1], index: 0, kind: input, shape index: {}]   ;;  %s704_s1 = inlined_call_operand.hbm [shape: f32[8,256], index: 1, kind: input, shape index: {}]   ;;  %s705_s2 = inlined_call_operand.hbm [shape: f32[8,256], index: 2, kind: output, shape index: {}]  }
   0x1   :  { %9 = vsyncpa [#allocation3 + $0x1], 0 }
   0x2   :  { %10 = vsyncpa [#allocation4], 0 }
   0x3   :  { %12 = vsyncpa [#allocation4 + $0x1], 0  ;;  %s528_s9 = smov 0   ;;  %s530_s10 = smov 0  }
   0x4   :  { %s532_s11 = smov 0   ;;  %s534_s12 = smov 0  }
   0x5   :  { %s536_s13 = smov 0   ;;  %s538_s14 = smov 0  }
   0x6 LB: > { %s318_s15 = sadd.s32 4294967295, %s508_s14   ;;  %s319_s16 = sadd.s32 4294967294, %s508_s14   ;;  %s508_s14 = sphi %s538_s14, %s18_s14   ;;  %s504_s13 = sphi %s536_s13, %s721_s13   ;;  %s500_s12 = sphi %s534_s12, %s720_s12   ;;  %s496_s11 = sphi %s532_s11, %s719_s11   ;;  %s492_s10 = sphi %s530_s10, %s718_s10   ;;  %s488_s9 = sphi %s528_s9, %s717_s9  }
   0x7   : > { %s27_s17 = sadd.s32 1, %s504_s13  ;;  %s65_s18 = sadd.s32 1, %s496_s11 }
   0x8   : > { %p28_p0 = scmp.ge.s32.totalorder %s27_s17, 2  ;;  %p72_p1 = scmp.ne.s32.totalorder %s496_s11, %s492_s10 }
   0x9   : > { %p73_p2 = scmp.eq.s32.totalorder %s508_s14, 0  ;;  %p78_p3 = scmp.ne.s32.totalorder %s492_s10, %s488_s9 }
   0xa   : > { %s723_s17 = smov (%p28_p0, %s27_s17), 0  ;;  %p79_p5 = scmp.eq.s32.totalorder %s318_s15, 0 }
   0xb   : > { %p569_p4 = por %p73_p2, %p72_p1  ;;  %s61_s20 = ssub.s32 %s504_s13, %s723_s17 }
   0xc   : > { %p104_p6 = scmp.eq.s32.totalorder %s318_s15, 1  ;;  %p63_p7 = scmp.eq.s32.totalorder %s61_s20, 0 }
   0xd   : > { %p575_p8 = por %p79_p5, %p78_p3  ;;  %p110_p10 = scmp.eq.s32.totalorder %s319_s16, 1 }
   0xe   : > { %p579_p9 = por %p104_p6, %p72_p1  ;;  %p344_p13 = scmp.lt.s32.totalorder %s508_s14, 2 }
   0xf   : > { %s584_s23 = scalar_select %p63_p7, %s496_s11, %s65_s18  }
  0x10   : > { %s709_s22 = scalar_select %p579_p9, 1, 0 }
  0x11   : > { %p586_p11 = por %p110_p10, %p78_p3  ;;  %s137_s25 = sand.u32 1, %s496_s11  }
  0x12   : > { %s323_s26 = sshll.u32 %s137_s25, 3  ;;  %s324_s27 = sshll.u32 %s504_s13, 7 }
  0x13   : > { %s710_s24 = scalar_select %p586_p11, 1, 0 }
  0x14   : > { %s597_s30 = scalar_lea.hbm %s704_s1, %s324_s27  ;;  %s141_s3 = scalar_lea.vmem [#allocation2], %s323_s26 }
  0x15   : > { %s150_s4 = sshll.u32 %s141_s3, 4  ;;  %p603_p0 = pnand %p344_p13, %p569_p4  ;;  %s599_s4 = int_to_ptr.vmem [resolvable:$true] %s150_s4 }
  0x16   : > { %s138_s6 = scalar_lea.sflag [#allocation3], %s137_s25  ;;  %s396_s7 = scalar_lea.hbm %s597_s30, 128 }
  0x17   : > { %p397_p3 = scmp.ne.s32.totalorder %s597_s30, %s396_s7  ;;  %p398_p5 = pneg %p603_p0 }
  0x18   : > { %s401_s16 = scalar_lea.hbm %s704_s1, 256  ;;  %p402_p4 = scmp.lt.u32.totalorder %s597_s30, %s704_s1 }
  0x19   : > { %p399_p6 = pnand %p398_p5, %p397_p3  ;;  %p403_p10 = scmp.lt.u32.totalorder %s401_s16, %s396_s7 }
  0x1a   : > { %p405_p12 = scmp.lt.u32.totalorder %s396_s7, %s597_s30 }
  0x1b   : > { %p400_p7 = pneg %p399_p6  ;;  %p404_p13 = por %p403_p10, %p402_p4 }
  0x1d   : > { %p406_p1 = por %p405_p12, %p404_p13 }
  0x1f   : > { %p407_p2 = pnand %p406_p1, %p400_p7 }
  0x21   : > { %410 = shalt.err (!%p407_p2)
}
  0x22   : > { %s411_s20 = scalar_lea.vmem %s599_s4, 128  ;;  %s510_s25 = smov [#allocation2]  }
  0x23   : > { %p412_p3 = scmp.ne.s32.totalorder %s599_s4, %s411_s20  ;;  %s416_s26 = sshll.u32 %s510_s25, 4  ;;  %s417_s26 = int_to_ptr.vmem [resolvable:$false] %s416_s26 }
  0x24   : > { %s418_s27 = scalar_lea.vmem %s417_s26, 256  ;;  %p419_p9 = scmp.lt.s32.totalorder %s599_s4, %s417_s26 }
  0x25   : > { %p414_p6 = pnand %p412_p3, %p398_p5  ;;  %p420_p4 = scmp.lt.s32.totalorder %s418_s27, %s411_s20 }
  0x27   : > { %p415_p11 = pneg %p414_p6  ;;  %p421_p10 = por %p420_p4, %p419_p9 }
  0x29   : > { %p422_p12 = pnand %p421_p10, %p415_p11 }
  0x2b   : > { %425 = shalt.err (!%p422_p12)
}
  0x2c   : > { %339 = dma.hbm_to_vmem [thread:$0]  (!%p603_p0), %s597_s30, 128, %s599_s4, %s138_s6  }
  0x2d   : > { %p712_p1 = scmp.lt.s32.totalorder %s508_s14, 3  ;;  %p713_p2 = scmp.ge.s32.totalorder %s508_s14, 1 }
  0x2f   : > { %p156_p5 = pnand %p713_p2, %p712_p1 }
  0x30   : > { %s639_s28 = sand.u32 (!%p156_p5), 1, %s492_s10  }
  0x31   : > { %159 = sbr.rel (%p156_p5) target bundleno = 204 (0xcc), region = 28  ;;  %s326_s29 = sshll.u32 (!%p156_p5), %s639_s28, 3 }
  0x32   : > { %s162_s3 = scalar_lea.sflag (!%p156_p5), [#allocation3], %s639_s28  ;;  %s165_s7 = scalar_lea.vmem (!%p156_p5), [#allocation2], %s326_s29 }
  0x38   : > { %479 = dma.done.wait (%p575_p8), %s162_s3, 128  }
  0x39   : > { %481 = vsyncadd (%p575_p8), %s162_s3, 4294967168  ;;  %v511_v0 = vmov 0   ;;  %v195_v1 = vld [vmem:[%s703_s0] sm:$0xff]  ;;  %s329_s5 = sshll.u32 %s500_s12, 7  ;;  %s189_s6 = scalar_lea.vmem [#allocation5], %s326_s29 }
  0x3a   : > { %395 = vset.pattern.permute.xlu0 %v511_v0  ;;  %v194_v2 = vld [vmem:[%s165_s7] sm:$0xff]  ;;  %s221_s8 = sshll.u32 %s189_s6, 4  ;;  %s654_s16 = scalar_lea.hbm %s705_s2, %s329_s5  ;;  %s656_s8 = int_to_ptr.vmem [resolvable:$true] %s221_s8 }
  0x3b   : > { %199 = vperm.xlu0 %395, %v195_v1   ;;  %vm196_vm0 = vcmp.ge.f32.partialorder %v194_v2, 0.0  ;;  %s206_s18 = scalar_lea.sflag [#allocation4], %s639_s28  ;;  %s426_s19 = scalar_lea.vmem %s656_s8, 128 }
  0x3c   : > { %p427_p8 = scmp.ne.s32.totalorder %s656_s8, %s426_s19  ;;  %p714_p9 = scmp.ne.s32.totalorder %s709_s22, 0 }
  0x3d   : > { %s512_s12 = smov [#allocation5]  }
  0x3e   : > { %p428_p11 = pnand %p427_p8, %p714_p9  ;;  %s430_s20 = sshll.u32 %s512_s12, 4  ;;  %s431_s20 = int_to_ptr.vmem [resolvable:$false] %s430_s20 }
  0x3f   : > { %s432_s25 = scalar_lea.vmem %s431_s20, 256  ;;  %p433_p7 = scmp.lt.s32.totalorder %s656_s8, %s431_s20 }
  0x40   : > { %p429_p0 = pneg %p428_p11  ;;  %p434_p13 = scmp.lt.s32.totalorder %s432_s25, %s426_s19 }
  0x42   : > { %p435_p3 = por %p434_p13, %p433_p7 }
  0x44   : > { %p436_p6 = pnand %p435_p3, %p429_p0 }
  0xba   : > { %v200_v3 = vpop.permute.xlu0 %199 }
  0xbb   : > { %v202_v4 = vmul.f32 %v200_v3, %v194_v2 }
  0xbd   : > { %v203_v5 = vsel %vm196_vm0, %v194_v2, %v202_v4 }
  0xbe   : > { %204 = vst [vmem:[%s189_s6] sm:$0xff] %v203_v5 }
  0xbf   : > { %439 = shalt.err (!%p436_p6)
}
  0xc0   : > { %s440_s26 = scalar_lea.hbm %s654_s16, 128  ;;  %s444_s29 = scalar_lea.hbm %s705_s2, 256 }
  0xc1   : > { %p441_p4 = scmp.ne.s32.totalorder %s654_s16, %s440_s26  ;;  %p445_p1 = scmp.lt.u32.totalorder %s654_s16, %s705_s2 }
  0xc2   : > { %p446_p2 = scmp.lt.u32.totalorder %s444_s29, %s440_s26  ;;  %p448_p8 = scmp.lt.u32.totalorder %s440_s26, %s654_s16 }
  0xc3   : > { %p442_p10 = pnand %p441_p4, %p714_p9 }
  0xc4   : > { %p447_p5 = por %p446_p2, %p445_p1 }
  0xc5   : > { %p443_p12 = pneg %p442_p10 }
  0xc6   : > { %p449_p11 = por %p448_p8, %p447_p5 }
  0xc8   : > { %p450_p0 = pnand %p449_p11, %p443_p12 }
  0xca   : > { %453 = shalt.err (!%p450_p0)
}
  0xcb   : > { %334 = dma.vmem_to_hbm [thread:$0]  (%p714_p9), %s656_s8, 128, %s654_s16, %s206_s18  }
  0xcc PF: > { %s233_s30 = sand.u32 1, %s488_s9   ;;  %p715_p7 = scmp.ne.s32.totalorder %s710_s24, 0 }
  0xcd   : > { %p716_p13 = scmp.ge.s32.totalorder %s508_s14, 2  ;;  %s234_s4 = scalar_lea.sflag [#allocation4], %s233_s30 }
  0xcf   : > { %p341_p3 = pnand %p716_p13, %p715_p7 }
  0xd1   : > { %483 = dma.done.wait (!%p341_p3), %s234_s4, 128  }
  0xd2   : > { %485 = vsyncadd (!%p341_p3), %s234_s4, 4294967168  ;;  %s18_s14 = sadd.s32 1, %s508_s14   ;;  %s717_s9 = smov %s492_s10 }
  0xd3   : > { %p15_p6 = scmp.ge.s32.totalorder %s18_s14, 4   ;;  %s718_s10 = smov %s496_s11 }
  0xd4   : > { %s719_s11 = smov %s584_s23  ;;  %s720_s12 = smov %s504_s13 }
  0xd5   : > { %s721_s13 = smov %s723_s17  ;;  %17 = sbr.rel (!%p15_p6) target bundleno = 6 (0x6), region = 76 }
  0xdc   :  { %239 = vsyncpa [#allocation3], 1 }
  0xdd   :  { %241 = vsyncpa [#allocation3 + $0x1], 1 }
  0xde   :  { %242 = vsyncpa [#allocation4], 1 }
  0xdf   :  { %244 = vsyncpa [#allocation4 + $0x1], 1 }

</bundles_post_ra>
